<compile_context>
chip_gen: v6e
topology: v6e:2x2x1
jax: 0.10.0
libtpu: 0.0.40
codegen_flags: <defaults>
</compile_context>

<pallas_src>
import math
from functools import partial

import jax
import jax.numpy as jnp
from jax.experimental import pallas as pl
from jax.experimental.pallas import tpu as pltpu


def _round_up(a: int, b: int) -> int:
    return ((a + b - 1) // b) * b


def _affine_kernel(x_ref, w_ref, b_ref, o_ref, acc_ref, *, k_rem: int):
    # x_ref: (tm, tk)   activations tile
    # w_ref: (tn, tk)   weight tile, PyTorch layout (out, in) -- no transpose in HBM
    # b_ref: (1,  tn)   bias tile
    # o_ref: (tm, tn)   output tile
    # acc_ref: (tm, tn) f32 accumulator scratch (resident across the K loop)
    k = pl.program_id(2)
    nk = pl.num_programs(2)

    @pl.when(k == 0)
    def _():
        acc_ref[...] = jnp.zeros_like(acc_ref)

    x = x_ref[...]
    w = w_ref[...]

    if k_rem:  # static: only emitted when in_dim % tk != 0
        # Zero the out-of-range K columns of BOTH operands on the last K step so
        # stale data in the partial boundary block cannot reach the contraction.
        is_last = k == nk - 1
        col_ok = jax.lax.broadcasted_iota(jnp.int32, (1, x.shape[1]), 1) < k_rem
        keep = jnp.logical_or(jnp.logical_not(is_last), col_ok)
        x = jnp.where(keep, x, jnp.zeros_like(x))
        w = jnp.where(keep, w, jnp.zeros_like(w))

    # y[m, n] = sum_k x[m, k] * w[n, k]   (contraction on last dim of both)
    acc_ref[...] += jax.lax.dot_general(
        x, w,
        dimension_numbers=(((1,), (1,)), ((), ())),
        preferred_element_type=jnp.float32,
    )

    @pl.when(k == nk - 1)
    def _():
        o_ref[...] = (acc_ref[...] + b_ref[...].astype(jnp.float32)).astype(o_ref.dtype)


def affine_linear(x, weight, bias, *, tm=256, tn=512, tk=512, compute_dtype=None):
    """y = x @ weight.T + bias  (weight: (out_dim, in_dim), bias: (out_dim,)).

    compute_dtype: optionally cast x/weight (e.g. jnp.bfloat16 on v6e/v7x) before
    the MXU; accumulation stays f32 and the output keeps x.dtype.
    """
    in_dim = x.shape[-1]
    out_dim = weight.shape[0]
    lead = x.shape[:-1]
    m = math.prod(lead) if lead else 1
    out_dtype = x.dtype

    x2 = x.reshape(m, in_dim)
    if compute_dtype is not None:
        x2 = x2.astype(compute_dtype)
        weight = weight.astype(compute_dtype)

    # Lane-dense output: if out_dim < 128, pad W/bias rows up to 128 so the
    # output stores use all 128 lanes; slice the padded columns off afterwards.
    n_store = out_dim
    if out_dim < 128:
        n_store = 128
        weight = jnp.pad(weight, ((0, n_store - out_dim), (0, 0)))
        bias = jnp.pad(bias, (0, n_store - out_dim))
    b2 = bias.reshape(1, n_store)

    # ---- tile sizes, clamped to the problem and kept (8,128)-legal ----
    tm_eff = min(tm, _round_up(m, 8))                 # multiple of 8 (sublanes)
    tn_eff = n_store if n_store <= tn else tn         # tn default is a 128-multiple
    tk_eff = in_dim if in_dim <= tk else tk           # tk default is a 128-multiple
    k_rem = in_dim % tk_eff                           # nonzero only when K is tiled raggedly

    grid = (pl.cdiv(m, tm_eff), pl.cdiv(n_store, tn_eff), pl.cdiv(in_dim, tk_eff))

    cost = pl.CostEstimate(
        flops=2 * m * in_dim * out_dim,
        transcendentals=0,
        bytes_accessed=(x2.size * x2.dtype.itemsize
                        + weight.size * weight.dtype.itemsize
                        + b2.size * b2.dtype.itemsize
                        + m * out_dim * jnp.dtype(out_dtype).itemsize),
    )

    out = pl.pallas_call(
        partial(_affine_kernel, k_rem=k_rem),
        out_shape=jax.ShapeDtypeStruct((m, n_store), out_dtype),
        grid_spec=pltpu.PrefetchScalarGridSpec(
            num_scalar_prefetch=0,
            grid=grid,
            in_specs=[
                pl.BlockSpec((tm_eff, tk_eff), lambda i, j, k: (i, k)),  # x
                pl.BlockSpec((tn_eff, tk_eff), lambda i, j, k: (j, k)),  # W (out,in)
                pl.BlockSpec((1, tn_eff), lambda i, j, k: (0, j)),       # bias
            ],
            out_specs=pl.BlockSpec((tm_eff, tn_eff), lambda i, j, k: (i, j)),
            scratch_shapes=[pltpu.VMEM((tm_eff, tn_eff), jnp.float32)],
        ),
        compiler_params=pltpu.CompilerParams(
            dimension_semantics=("parallel", "parallel", "arbitrary"),
            vmem_limit_bytes=32 * 1024 * 1024,
        ),
        cost_estimate=cost,
    )(x2, weight, b2)

    if n_store != out_dim:
        out = out[:, :out_dim]
    return out.reshape(*lead, out_dim)


if __name__ == "__main__":
    # AffineLinear(in_dim=32, out_dim=32) applied to input of shape (2, 8, 32)
    in_dim, out_dim = 32, 32
    batch, seq = 2, 8

    key = jax.random.PRNGKey(0)
    kx, kw, kb = jax.random.split(key, 3)

    x = jax.random.normal(kx, (batch, seq, in_dim), dtype=jnp.float32)
    bound = 1.0 / (in_dim ** 0.5)
    weight = jax.random.uniform(kw, (out_dim, in_dim), jnp.float32, -bound, bound)
    bias = jax.random.uniform(kb, (out_dim,), jnp.float32, -bound, bound)

    y = jax.block_until_ready(affine_linear(x, weight, bias))
    y_ref = x @ weight.T + bias
    assert y.shape == (batch, seq, out_dim)
    assert jnp.allclose(y, y_ref, atol=1e-5, rtol=1e-5)

    # Second check: larger ragged shapes exercising K tiling + tail masking,
    # a partial M block, and the lane-dense (>=128) N path.
    in2, out2 = 600, 384
    k2 = jax.random.PRNGKey(1)
    kx2, kw2, kb2 = jax.random.split(k2, 3)
    x_big = jax.random.normal(kx2, (2, 50, in2), dtype=jnp.float32)
    w_big = jax.random.uniform(kw2, (out2, in2), jnp.float32, -1.0, 1.0) / (in2 ** 0.5)
    b_big = jax.random.uniform(kb2, (out2,), jnp.float32, -0.1, 0.1)

    y_big = jax.block_until_ready(affine_linear(x_big, w_big, b_big))
    y_big_ref = x_big @ w_big.T + b_big
    assert y_big.shape == (2, 50, out2)
    assert jnp.allclose(y_big, y_big_ref, atol=5e-3, rtol=5e-3)

    print("KERNEL_OK")
</pallas_src>

<mosaic_0001>
module attributes {stable_mosaic.version = 11 : i64} {
  func.func @_affine_kernel(%arg0: i32, %arg1: i32, %arg2: i32, %arg3: memref<16x32xf32, #tpu.memory_space<vmem>>, %arg4: memref<128x32xf32, #tpu.memory_space<vmem>>, %arg5: memref<1x128xf32, #tpu.memory_space<vmem>>, %arg6: memref<16x128xf32, #tpu.memory_space<vmem>>, %arg7: memref<16x128xf32, #tpu.memory_space<vmem>>) attributes {dimension_semantics = [#tpu.dimension_semantics<parallel>, #tpu.dimension_semantics<parallel>, #tpu.dimension_semantics<arbitrary>], iteration_bounds = array<i64: 1, 1, 1>, scalar_prefetch = 0 : i64, scratch_operands = 1 : i64, tpu.core_type = #tpu.core_type<tc>, window_params = [{transform_indices = @transform_0, window_bounds = array<i64: 16, 32>}, {transform_indices = @transform_1, window_bounds = array<i64: 128, 32>}, {transform_indices = @transform_2, window_bounds = array<i64: 1, 128>}, {transform_indices = @transform_3, window_bounds = array<i64: 16, 128>}]} {
    %c0_i32 = arith.constant 0 : i32
    %0 = arith.cmpi eq, %arg2, %c0_i32 : i32
    %1 = arith.extui %0 : i1 to i32
    %c0_i32_0 = arith.constant 0 : i32
    %2 = arith.cmpi ne, %1, %c0_i32_0 : i32
    scf.if %2 {
      %cst_10 = arith.constant 0.000000e+00 : f32
      %12 = vector.broadcast %cst_10 : f32 to vector<16x128xf32>
      %c0_11 = arith.constant 0 : index
      %c0_12 = arith.constant 0 : index
      %13 = vector.load %arg7[%c0_11, %c0_12] : memref<16x128xf32, #tpu.memory_space<vmem>>, vector<16x128xf32>
      tpu.vector_store %arg7[%c0_11, %c0_12], %12 {strides = array<i32>} : memref<16x128xf32, #tpu.memory_space<vmem>>, vector<16x128xf32>,
    } else {
    }
    %c0 = arith.constant 0 : index
    %c0_1 = arith.constant 0 : index
    %3 = vector.load %arg3[%c0, %c0_1] : memref<16x32xf32, #tpu.memory_space<vmem>>, vector<16x32xf32>
    %c0_2 = arith.constant 0 : index
    %c0_3 = arith.constant 0 : index
    %4 = vector.load %arg4[%c0_2, %c0_3] : memref<128x32xf32, #tpu.memory_space<vmem>>, vector<128x32xf32>
    %c0_4 = arith.constant 0 : index
    %c0_5 = arith.constant 0 : index
    %5 = vector.load %arg7[%c0_4, %c0_5] : memref<16x128xf32, #tpu.memory_space<vmem>>, vector<16x128xf32>
    %cst = arith.constant dense<0.000000e+00> : vector<16x128xf32>
    %6 = tpu.matmul %3, %4, %cst {dimension_numbers = #tpu.dot_dimension_numbers<[1], [1], [0], [0], [0, 0, 1, 0], [], []>} : vector<16x32xf32>, vector<128x32xf32>, vector<16x128xf32> -> vector<16x128xf32>
    %7 = arith.addf %5, %6 : vector<16x128xf32>
    %c0_6 = arith.constant 0 : index
    %c0_7 = arith.constant 0 : index
    %8 = vector.load %arg7[%c0_6, %c0_7] : memref<16x128xf32, #tpu.memory_space<vmem>>, vector<16x128xf32>
    tpu.vector_store %arg7[%c0_6, %c0_7], %7 {strides = array<i32>} : memref<16x128xf32, #tpu.memory_space<vmem>>, vector<16x128xf32>,
    %c0_i32_8 = arith.constant 0 : i32
    %9 = arith.cmpi eq, %arg2, %c0_i32_8 : i32
    %10 = arith.extui %9 : i1 to i32
    %c0_i32_9 = arith.constant 0 : i32
    %11 = arith.cmpi ne, %10, %c0_i32_9 : i32
    scf.if %11 {
      %c0_10 = arith.constant 0 : index
      %c0_11 = arith.constant 0 : index
      %12 = vector.load %arg7[%c0_10, %c0_11] : memref<16x128xf32, #tpu.memory_space<vmem>>, vector<16x128xf32>
      %c0_12 = arith.constant 0 : index
      %c0_13 = arith.constant 0 : index
      %13 = vector.load %arg5[%c0_12, %c0_13] : memref<1x128xf32, #tpu.memory_space<vmem>>, vector<1x128xf32>
      %14 = vector.broadcast %13 : vector<1x128xf32> to vector<16x128xf32>
      %15 = arith.addf %12, %14 : vector<16x128xf32>
      %c0_14 = arith.constant 0 : index
      %c0_15 = arith.constant 0 : index
      %16 = vector.load %arg6[%c0_14, %c0_15] : memref<16x128xf32, #tpu.memory_space<vmem>>, vector<16x128xf32>
      tpu.vector_store %arg6[%c0_14, %c0_15], %15 {strides = array<i32>} : memref<16x128xf32, #tpu.memory_space<vmem>>, vector<16x128xf32>,
    } else {
    }
    return
  }
  func.func @transform_0(%arg0: i32, %arg1: i32, %arg2: i32) -> (i32, i32) {
    %c0_i32 = arith.constant 0 : i32
    return %arg0, %arg2 : i32, i32
  }
  func.func @transform_1(%arg0: i32, %arg1: i32, %arg2: i32) -> (i32, i32) {
    %c0_i32 = arith.constant 0 : i32
    return %arg1, %arg2 : i32, i32
  }
  func.func @transform_2(%arg0: i32, %arg1: i32, %arg2: i32) -> (i32, i32) {
    %c0_i32 = arith.constant 0 : i32
    %c0_i32_0 = arith.constant 0 : i32
    return %c0_i32, %arg1 : i32, i32
  }
  func.func @transform_3(%arg0: i32, %arg1: i32, %arg2: i32) -> (i32, i32) {
    %c0_i32 = arith.constant 0 : i32
    return %arg0, %arg1 : i32, i32
  }
}

</mosaic_0001>

<bundles_post_ra>
// kernel: tpu_custom_call.1
= control target key start
LH: loop header
LB: loop body
LE: loop exit
PB: predicated region body
PF: predicated region fallthrough
CT: control target
= control target key end

     0   :  { %vm41_vm0 = vcmask 261120   ;;  %s421_s0 = inlined_call_operand.vmem [shape: f32[16,32], index: 0, kind: input, shape index: {}]   ;;  %s422_s1 = inlined_call_operand.vmem [shape: f32[128,32], index: 1, kind: input, shape index: {}]   ;;  %s423_s2 = inlined_call_operand.vmem [shape: f32[1,128], index: 2, kind: input, shape index: {}]   ;;  %s424_s3 = inlined_call_operand.hbm [shape: f32[16,128], index: 3, kind: output, shape index: {}]  }
   0x1   :  { %v38_v0 = vld [vmem:[%s422_s1 + $0x78] sm:$0xff]  ;;  %v37_v1 = vld [vmem:[%s422_s1 + $0x70] sm:$0xff]  ;;  %v36_v2 = vld [vmem:[%s422_s1 + $0x68] sm:$0xff] }
   0x2   :  { %244 = vmatprep.subr.msk.mxu0 %vm41_vm0, %v38_v0  ;;  %v21_v3 = vld [vmem:[%s421_s0] sm:$0xff] }
   0x3   :  { %245 = vmatpush3.xpose.msk.msra.mxu0 %vm41_vm0, %v38_v0  ;;  %276 = vmatprep.mubr.msk.f32.mxu0 %vm41_vm0, %v21_v3 }
   0x4   :  { %246 = vmatprep.subr.msk.mxu0 %vm41_vm0, %v37_v1 }
   0x7   :  { %247 = vmatpush3.xpose.msk.msra.mxu0 %vm41_vm0, %v37_v1 }
   0x8   :  { %8 = vsyncpa [#allocation4], 0  ;;  %248 = vmatprep.subr.msk.mxu0 %vm41_vm0, %v36_v2  ;;  %v35_v4 = vld [vmem:[%s422_s1 + $0x60] sm:$0xff]  ;;  %v34_v5 = vld [vmem:[%s422_s1 + $0x58] sm:$0xff]  ;;  %s304_s23 = smov [#allocation3]  }
   0x9   :  { %v33_v6 = vld [vmem:[%s422_s1 + $0x50] sm:$0xff]  ;;  %v32_v7 = vld [vmem:[%s422_s1 + $0x48] sm:$0xff]  ;;  %v31_v8 = vld [vmem:[%s422_s1 + $0x40] sm:$0xff]  ;;  %s196_s24 = sshll.u32 %s304_s23, 4  ;;  %s197_s24 = int_to_ptr.vmem [resolvable:$true] %s196_s24 }
   0xa   :  { %v30_v9 = vld [vmem:[%s422_s1 + $0x38] sm:$0xff]  ;;  %v29_v10 = vld [vmem:[%s422_s1 + $0x30] sm:$0xff]  ;;  %v28_v11 = vld [vmem:[%s422_s1 + $0x28] sm:$0xff]  ;;  %p287_p1 = scmp.lt.s32.totalorder %s197_s24, %s197_s24 }
   0xb   :  { %249 = vmatpush3.xpose.msk.msra.mxu0 %vm41_vm0, %v36_v2  ;;  %v27_v12 = vld [vmem:[%s422_s1 + $0x20] sm:$0xff]  ;;  %v26_v13 = vld [vmem:[%s422_s1 + $0x18] sm:$0xff]  ;;  %v25_v14 = vld [vmem:[%s422_s1 + $0x10] sm:$0xff] }
   0xc   :  { %250 = vmatprep.subr.msk.mxu0 %vm41_vm0, %v35_v4  ;;  %v24_v15 = vld [vmem:[%s422_s1 + $0x8] sm:$0xff]  ;;  %v23_v16 = vld [vmem:[%s422_s1] sm:$0xff]  ;;  %s282_s1 = scalar_lea.vmem %s197_s24, 256 }
   0xd   :  { %v22_v17 = vld [vmem:[%s421_s0 + $0x8] sm:$0xff]  ;;  %v225_v18 = vld [vmem:[%s423_s2] ss:$0 sm:$0xff]  ;;  %p283_p0 = scmp.ne.s32.totalorder %s197_s24, %s282_s1  ;;  %p288_p2 = scmp.lt.s32.totalorder %s282_s1, %s282_s1 }
   0xf   :  { %251 = vmatpush3.xpose.msk.msra.mxu0 %vm41_vm0, %v35_v4  ;;  %p289_p3 = por %p288_p2, %p287_p1 }
  0x10   :  { %252 = vmatprep.subr.msk.mxu0 %vm41_vm0, %v34_v5 }
  0x11   :  { %p290_p4 = pnand %p289_p3, %p283_p0 }
  0x13   :  { %253 = vmatpush3.xpose.msk.msra.mxu0 %vm41_vm0, %v34_v5 }
  0x14   :  { %254 = vmatprep.subr.msk.mxu0 %vm41_vm0, %v33_v6 }
  0x17   :  { %255 = vmatpush3.xpose.msk.msra.mxu0 %vm41_vm0, %v33_v6 }
  0x18   :  { %256 = vmatprep.subr.msk.mxu0 %vm41_vm0, %v32_v7 }
  0x1b   :  { %257 = vmatpush3.xpose.msk.msra.mxu0 %vm41_vm0, %v32_v7 }
  0x1c   :  { %258 = vmatprep.subr.msk.mxu0 %vm41_vm0, %v31_v8 }
  0x1f   :  { %259 = vmatpush3.xpose.msk.msra.mxu0 %vm41_vm0, %v31_v8 }
  0x20   :  { %260 = vmatprep.subr.msk.mxu0 %vm41_vm0, %v30_v9 }
  0x23   :  { %261 = vmatpush3.xpose.msk.msra.mxu0 %vm41_vm0, %v30_v9 }
  0x24   :  { %262 = vmatprep.subr.msk.mxu0 %vm41_vm0, %v29_v10 }
  0x27   :  { %263 = vmatpush3.xpose.msk.msra.mxu0 %vm41_vm0, %v29_v10 }
  0x28   :  { %264 = vmatprep.subr.msk.mxu0 %vm41_vm0, %v28_v11 }
  0x2b   :  { %265 = vmatpush3.xpose.msk.msra.mxu0 %vm41_vm0, %v28_v11 }
  0x2c   :  { %266 = vmatprep.subr.msk.mxu0 %vm41_vm0, %v27_v12 }
  0x2f   :  { %267 = vmatpush3.xpose.msk.msra.mxu0 %vm41_vm0, %v27_v12 }
  0x30   :  { %268 = vmatprep.subr.msk.mxu0 %vm41_vm0, %v26_v13 }
  0x33   :  { %269 = vmatpush3.xpose.msk.msra.mxu0 %vm41_vm0, %v26_v13 }
  0x34   :  { %270 = vmatprep.subr.msk.mxu0 %vm41_vm0, %v25_v14 }
  0x37   :  { %271 = vmatpush3.xpose.msk.msra.mxu0 %vm41_vm0, %v25_v14 }
  0x38   :  { %272 = vmatprep.subr.msk.mxu0 %vm41_vm0, %v24_v15 }
  0x3b   :  { %273 = vmatpush3.xpose.msk.msra.mxu0 %vm41_vm0, %v24_v15 }
  0x3c   :  { %274 = vmatprep.subr.msk.mxu0 %vm41_vm0, %v23_v16 }
  0x3f   :  { %275 = vmatpush3.xpose.msk.msra.mxu0 %vm41_vm0, %v23_v16 }
  0x42   :  { %277 = vmatmul.mubr.msk.f32.vlgmr.msra.gmra.mxu0 %vm41_vm0, %v22_v17 }
 0x102   :  { %v278_v19 = vpop.f32.mrf.mxu0 }
 0x103   :  { %v188_v20 = vadd.f32 %v278_v19, %v225_v18 }
 0x104   :  { %v162_v21 = vpop.f32.mrf.mxu0 }
 0x105   :  { %190 = vst [vmem:[#allocation3 + $0x8] sm:$0xff] %v188_v20  ;;  %v187_v22 = vadd.f32 %v225_v18, %v162_v21 }
 0x107   :  { %189 = vst [vmem:[#allocation3] sm:$0xff] %v187_v22 }
 0x108   :  { %293 = shalt.err (!%p290_p4)
}
 0x109   :  { %s305_s0 = smov 128   ;;  %s306_s25 = smov 8  }
 0x10a   :  { %202 = dma.vmem_to_hbm [thread:$0]  %s197_s24, 256, %s424_s3, [#allocation4], %s305_s0, %s305_s0, %s306_s25  }
 0x10b   :  { %302 = dma.done.wait [#allocation4], 256  }
 0x10c   :  { %303 = vsyncadd [#allocation4], 4294967040 }
 0x10d   :  { %206 = vsyncpa [#allocation4], 1 }

</bundles_post_ra>
